<compile_context>
chip_gen: v7x
topology: tpu7x:2x2x1
jax: 0.10.0
libtpu: 0.0.40
codegen_flags: <defaults>
</compile_context>

<pallas_src>
import functools

import jax
import jax.numpy as jnp
from jax.experimental import pallas as pl
from jax.experimental.pallas import tpu as pltpu


def _round_up(x, m):
    return (x + m - 1) // m * m


def _attentive_pool_kernel(x_ref, len_ref, wa_t_ref, ba_ref, w_ref, b_ref, o_ref,
                           *, t_valid):
    """One block of Bt batch elements per grid step.

    x_ref   : (Bt, Tp, Hp)  feature tile (input dtype)
    len_ref : (Bt, 1)       int32 valid lengths
    wa_t_ref: (Hp, Hp)      W_a.weight transposed (in, out), input dtype
    ba_ref  : (1, Hp)       W_a.bias (f32)
    w_ref   : (1, Hp)       W.weight row (f32)
    b_ref   : (1, 1)        W.bias (f32)
    o_ref   : (Bt, Hp)      pooled output
    """
    bt, tp, hp = x_ref.shape
    x = x_ref[...]                                           # (Bt, Tp, Hp), input dtype

    # h = ReLU(x @ W_a^T + b_a) as ONE big MXU matmul over the fused Bt*Tp rows.
    x2d = x.reshape(bt * tp, hp)
    h = jnp.dot(x2d, wa_t_ref[...], preferred_element_type=jnp.float32)  # (Bt*Tp, Hp) f32
    h = jnp.maximum(h + ba_ref[...], 0.0)

    # logits[b, t] = sum_h h[b, t, h] * w[h] + b  — lane-dense (Bt, Tp) layout
    # (score as a lane-dim dot so the softmax runs on full 128-lane vregs).
    h3 = h.reshape(bt, tp, hp)
    logits = jnp.sum(h3 * w_ref[...], axis=-1) + b_ref[...]              # (Bt, Tp) f32

    # Additive 0/1 length mask built in-kernel (PyTorch bool mask + float logits).
    t_idx = jax.lax.broadcasted_iota(jnp.int32, (bt, tp), 1)
    logits = logits + jnp.where(t_idx < len_ref[...], 1.0, 0.0)

    if tp != t_valid:
        # Time steps introduced purely by wrapper padding must get zero softmax
        # weight (they do not exist in the original module's T).
        logits = jnp.where(t_idx < t_valid, logits, jnp.float32(-1e30))

    # Lane-dense softmax over the time axis.
    m = jnp.max(logits, axis=-1, keepdims=True)                          # (Bt, 1)
    e = jnp.exp(logits - m)                                              # (Bt, Tp)
    att = e * pl.reciprocal(jnp.sum(e, axis=-1, keepdims=True), approx=True)

    # Pooled output on the MXU: out[b, h] = sum_t att[b, t] * x[b, t, h].
    att3 = att[:, None, :].astype(x.dtype)                               # (Bt, 1, Tp)
    out = jnp.einsum('bqt,bth->bqh', att3, x,
                     preferred_element_type=jnp.float32)                 # (Bt, 1, Hp)
    o_ref[...] = out[:, 0, :].astype(o_ref.dtype)


def attentive_pooling(feature_BxTxH, features_len, params, *, block_b=None):
    """JAX wrapper: pads to TPU-friendly shapes and launches the Pallas kernel."""
    B, T, H = feature_BxTxH.shape
    wa_w, wa_b, w_w, w_b = params  # wa_w: (H,H) [out,in], wa_b: (H,), w_w: (1,H), w_b: (1,)
    dt = feature_BxTxH.dtype

    # Lane/sublane-friendly padded sizes.
    Hp = _round_up(H, 128)
    Tp = _round_up(T, 8)

    if block_b is None:
        # VMEM-aware default: keep the double-buffered x block around <= ~4 MiB
        # (safe on v7x's 64 MiB VMEM), block_b a multiple of 8 for sublane
        # alignment, and never bigger than the (padded) batch.
        row_bytes = Tp * Hp * feature_BxTxH.dtype.itemsize
        cap = max(8, ((4 * 1024 * 1024) // (2 * max(row_bytes, 1))) // 8 * 8)
        block_b = int(min(cap, _round_up(B, 8)))
        # Keep >= 2 grid steps when the batch allows it (v7x shards 'parallel'
        # grid axes across its 2 TensorCores).
        if B > 8:
            block_b = min(block_b, _round_up((B + 1) // 2, 8))
    Bp = _round_up(B, block_b)

    # Pad inputs (zeros; padded rows/cols provably contribute nothing, see kernel).
    x = feature_BxTxH
    if (Bp, Tp, Hp) != (B, T, H):
        x = jnp.pad(x, ((0, Bp - B), (0, Tp - T), (0, Hp - H)))
    lens = jnp.pad(features_len.astype(jnp.int32), (0, Bp - B)).reshape(Bp, 1)

    # Weights: keep the streaming/matmul operands in the input dtype (no f32
    # upcast of the bandwidth-bound path); biases / score vector stay f32 since
    # the post-matmul math runs in f32 anyway.
    wa_t = jnp.pad(wa_w.T, ((0, Hp - H), (0, Hp - H))).astype(dt)          # (Hp, Hp) (in,out)
    ba = jnp.pad(wa_b, (0, Hp - H)).astype(jnp.float32).reshape(1, Hp)     # (1, Hp)
    w = jnp.pad(w_w[0], (0, Hp - H)).astype(jnp.float32).reshape(1, Hp)    # (1, Hp)
    b = w_b.astype(jnp.float32).reshape(1, 1)                              # (1, 1)

    kernel = functools.partial(_attentive_pool_kernel, t_valid=T)

    out = pl.pallas_call(
        kernel,
        out_shape=jax.ShapeDtypeStruct((Bp, Hp), dt),
        grid_spec=pltpu.PrefetchScalarGridSpec(
            num_scalar_prefetch=0,
            grid=(Bp // block_b,),
            in_specs=[
                pl.BlockSpec((block_b, Tp, Hp), lambda i: (i, 0, 0)),  # x
                pl.BlockSpec((block_b, 1), lambda i: (i, 0)),          # lengths
                pl.BlockSpec((Hp, Hp), lambda i: (0, 0)),              # W_a^T
                pl.BlockSpec((1, Hp), lambda i: (0, 0)),               # b_a
                pl.BlockSpec((1, Hp), lambda i: (0, 0)),               # w
                pl.BlockSpec((1, 1), lambda i: (0, 0)),                # b
            ],
            out_specs=pl.BlockSpec((block_b, Hp), lambda i: (i, 0)),
        ),
        compiler_params=pltpu.CompilerParams(
            dimension_semantics=("parallel",),
            vmem_limit_bytes=32 * 1024 * 1024,
        ),
    )(x, lens, wa_t, ba, w, b)

    return out[:B, :H]


def _reference(feature_BxTxH, features_len, params):
    """Pure-JAX reference mirroring the PyTorch module."""
    wa_w, wa_b, w_w, w_b = params
    B, T, H = feature_BxTxH.shape
    mask = (jnp.arange(T)[None, :] < features_len[:, None]).astype(jnp.float32)
    h = jax.nn.relu(feature_BxTxH @ wa_w.T + wa_b)
    logits = (h @ w_w.T + w_b)[..., 0]            # (B, T)
    logits = mask + logits
    att = jax.nn.softmax(logits, axis=-1)[..., None]
    return jnp.sum(feature_BxTxH * att, axis=1)


if __name__ == "__main__":
    B, T, H = 2, 8, 32  # batch, seq, hidden (input_size = H)

    key = jax.random.PRNGKey(0)
    kx, k1, k2, k3, k4 = jax.random.split(key, 5)

    # Deterministic synthetic parameters (nn.Linear-style shapes: weight is [out, in]).
    bound_a = 1.0 / jnp.sqrt(H)
    wa_w = jax.random.uniform(k1, (H, H), jnp.float32, -bound_a, bound_a)  # W_a.weight
    wa_b = jax.random.uniform(k2, (H,), jnp.float32, -bound_a, bound_a)    # W_a.bias
    w_w = jax.random.uniform(k3, (1, H), jnp.float32, -bound_a, bound_a)   # W.weight
    w_b = jax.random.uniform(k4, (1,), jnp.float32, -bound_a, bound_a)     # W.bias
    params = (wa_w, wa_b, w_w, w_b)

    feature = jax.random.normal(kx, (B, T, H), jnp.float32)
    features_len = jnp.array([8, 5], dtype=jnp.int32)  # max == T, as the module assumes

    out = attentive_pooling(feature, features_len, params)
    out = jax.block_until_ready(out)

    ref = _reference(feature, features_len, params)
    assert out.shape == (B, H)
    # Tolerance accounts for the EUP approximate reciprocal in the softmax.
    assert jnp.allclose(out, ref, atol=2e-3, rtol=2e-3), (out, ref)

    print("KERNEL_OK")
</pallas_src>

<mosaic_0001>
module attributes {stable_mosaic.version = 11 : i64} {
  func.func @_attentive_pool_kernel(%arg0: i32, %arg1: memref<8x8x128xf32, #tpu.memory_space<vmem>>, %arg2: memref<8x1xi32, #tpu.memory_space<vmem>>, %arg3: memref<128x128xf32, #tpu.memory_space<vmem>>, %arg4: memref<1x128xf32, #tpu.memory_space<vmem>>, %arg5: memref<1x128xf32, #tpu.memory_space<vmem>>, %arg6: memref<1x1xf32, #tpu.memory_space<vmem>>, %arg7: memref<8x128xf32, #tpu.memory_space<vmem>>) attributes {dimension_semantics = [#tpu.dimension_semantics<parallel>], iteration_bounds = array<i64: 1>, scalar_prefetch = 0 : i64, scratch_operands = 0 : i64, tpu.core_type = #tpu.core_type<tc>, window_params = [{transform_indices = @transform_0, window_bounds = array<i64: 8, 8, 128>}, {transform_indices = @transform_1, window_bounds = array<i64: 8, 1>}, {pipeline_mode = #tpu.pipeline_mode<synchronous>, transform_indices = @transform_2, window_bounds = array<i64: 128, 128>}, {pipeline_mode = #tpu.pipeline_mode<synchronous>, transform_indices = @transform_3, window_bounds = array<i64: 1, 128>}, {pipeline_mode = #tpu.pipeline_mode<synchronous>, transform_indices = @transform_4, window_bounds = array<i64: 1, 128>}, {pipeline_mode = #tpu.pipeline_mode<synchronous>, transform_indices = @transform_5, window_bounds = array<i64: 1, 1>}, {transform_indices = @transform_6, window_bounds = array<i64: 8, 128>}]} {
    %c0 = arith.constant 0 : index
    %c0_0 = arith.constant 0 : index
    %c0_1 = arith.constant 0 : index
    %0 = vector.load %arg1[%c0, %c0_0, %c0_1] : memref<8x8x128xf32, #tpu.memory_space<vmem>>, vector<8x8x128xf32>
    %1 = vector.shape_cast %0 : vector<8x8x128xf32> to vector<64x128xf32>
    %c0_2 = arith.constant 0 : index
    %c0_3 = arith.constant 0 : index
    %2 = vector.load %arg3[%c0_2, %c0_3] : memref<128x128xf32, #tpu.memory_space<vmem>>, vector<128x128xf32>
    %cst = arith.constant dense<0.000000e+00> : vector<64x128xf32>
    %3 = tpu.matmul %1, %2, %cst {dimension_numbers = #tpu.dot_dimension_numbers<[1], [0], [0], [1], [0, 0, 1, 1], [], []>} : vector<64x128xf32>, vector<128x128xf32>, vector<64x128xf32> -> vector<64x128xf32>
    %c0_4 = arith.constant 0 : index
    %c0_5 = arith.constant 0 : index
    %4 = vector.load %arg4[%c0_4, %c0_5] : memref<1x128xf32, #tpu.memory_space<vmem>>, vector<1x128xf32>
    %5 = vector.broadcast %4 : vector<1x128xf32> to vector<64x128xf32>
    %6 = arith.addf %3, %5 : vector<64x128xf32>
    %cst_6 = arith.constant 0.000000e+00 : f32
    %7 = vector.broadcast %cst_6 : f32 to vector<64x128xf32>
    %8 = arith.maximumf %6, %7 : vector<64x128xf32>
    %9 = vector.shape_cast %8 : vector<64x128xf32> to vector<8x8x128xf32>
    %c0_7 = arith.constant 0 : index
    %c0_8 = arith.constant 0 : index
    %10 = vector.load %arg5[%c0_7, %c0_8] : memref<1x128xf32, #tpu.memory_space<vmem>>, vector<1x128xf32>
    %11 = vector.shape_cast %10 : vector<1x128xf32> to vector<1x1x128xf32>
    %12 = vector.broadcast %11 : vector<1x1x128xf32> to vector<8x8x128xf32>
    %13 = arith.mulf %9, %12 : vector<8x8x128xf32>
    %cst_9 = arith.constant dense<0.000000e+00> : vector<8x8xf32>
    %14 = vector.multi_reduction <add>, %13, %cst_9 [2] : vector<8x8x128xf32> to vector<8x8xf32>
    %c0_10 = arith.constant 0 : index
    %c0_11 = arith.constant 0 : index
    %15 = vector.load %arg6[%c0_10, %c0_11] : memref<1x1xf32, #tpu.memory_space<vmem>>, vector<1x1xf32>
    %16 = vector.broadcast %15 : vector<1x1xf32> to vector<8x8xf32>
    %17 = arith.addf %14, %16 : vector<8x8xf32>
    %18 = tpu.iota {dimensions = array<i32: 1>} : vector<8x8xi32>
    %c0_12 = arith.constant 0 : index
    %c0_13 = arith.constant 0 : index
    %19 = vector.load %arg2[%c0_12, %c0_13] : memref<8x1xi32, #tpu.memory_space<vmem>>, vector<8x1xi32>
    %20 = vector.broadcast %19 : vector<8x1xi32> to vector<8x8xi32>
    %21 = arith.cmpi slt, %18, %20 : vector<8x8xi32>
    %cst_14 = arith.constant 1.000000e+00 : f32
    %cst_15 = arith.constant 0.000000e+00 : f32
    %22 = vector.broadcast %cst_14 : f32 to vector<8x8xf32>
    %23 = vector.broadcast %cst_15 : f32 to vector<8x8xf32>
    %24 = arith.select %21, %22, %23 : vector<8x8xi1>, vector<8x8xf32>
    %25 = arith.addf %17, %24 : vector<8x8xf32>
    %cst_16 = arith.constant dense<0xFF800000> : vector<8xf32>
    %26 = vector.multi_reduction <maximumf>, %25, %cst_16 [1] : vector<8x8xf32> to vector<8xf32>
    %27 = vector.shape_cast %26 : vector<8xf32> to vector<8x1xf32>
    %28 = vector.broadcast %27 : vector<8x1xf32> to vector<8x8xf32>
    %29 = arith.subf %25, %28 : vector<8x8xf32>
    %30 = math.exp %29 : vector<8x8xf32>
    %cst_17 = arith.constant dense<0.000000e+00> : vector<8xf32>
    %31 = vector.multi_reduction <add>, %30, %cst_17 [1] : vector<8x8xf32> to vector<8xf32>
    %32 = vector.shape_cast %31 : vector<8xf32> to vector<8x1xf32>
    %33 = tpu.reciprocal %32 {approx = true} : vector<8x1xf32> -> vector<8x1xf32>
    %34 = vector.broadcast %33 : vector<8x1xf32> to vector<8x8xf32>
    %35 = arith.mulf %30, %34 : vector<8x8xf32>
    %36 = vector.shape_cast %35 : vector<8x8xf32> to vector<8x1x8xf32>
    "tpu.trace_start"() <{level = 10 : i32, message = "bqt,bth->bqh"}> : () -> ()
    %cst_18 = arith.constant dense<0.000000e+00> : vector<8x1x128xf32>
    %37 = tpu.matmul %36, %0, %cst_18 {dimension_numbers = #tpu.dot_dimension_numbers<[2], [1], [1], [2], [0, 0, 0, 1, 1, 2], [0], [0]>} : vector<8x1x8xf32>, vector<8x8x128xf32>, vector<8x1x128xf32> -> vector<8x1x128xf32>
    "tpu.trace_stop"() : () -> ()
    %38 = vector.shape_cast %37 : vector<8x1x128xf32> to vector<8x128xf32>
    %c0_19 = arith.constant 0 : index
    %c0_20 = arith.constant 0 : index
    %39 = vector.load %arg7[%c0_19, %c0_20] : memref<8x128xf32, #tpu.memory_space<vmem>>, vector<8x128xf32>
    tpu.vector_store %arg7[%c0_19, %c0_20], %38 {strides = array<i32>} : memref<8x128xf32, #tpu.memory_space<vmem>>, vector<8x128xf32>,
    return
  }
  func.func @transform_0(%arg0: i32) -> (i32, i32, i32) {
    %c0_i32 = arith.constant 0 : i32
    %c0_i32_0 = arith.constant 0 : i32
    %c0_i32_1 = arith.constant 0 : i32
    return %arg0, %c0_i32, %c0_i32_0 : i32, i32, i32
  }
  func.func @transform_1(%arg0: i32) -> (i32, i32) {
    %c0_i32 = arith.constant 0 : i32
    %c0_i32_0 = arith.constant 0 : i32
    return %arg0, %c0_i32 : i32, i32
  }
  func.func @transform_2(%arg0: i32) -> (i32, i32) {
    %c0_i32 = arith.constant 0 : i32
    %c0_i32_0 = arith.constant 0 : i32
    %c0_i32_1 = arith.constant 0 : i32
    return %c0_i32, %c0_i32_0 : i32, i32
  }
  func.func @transform_3(%arg0: i32) -> (i32, i32) {
    %c0_i32 = arith.constant 0 : i32
    %c0_i32_0 = arith.constant 0 : i32
    %c0_i32_1 = arith.constant 0 : i32
    return %c0_i32, %c0_i32_0 : i32, i32
  }
  func.func @transform_4(%arg0: i32) -> (i32, i32) {
    %c0_i32 = arith.constant 0 : i32
    %c0_i32_0 = arith.constant 0 : i32
    %c0_i32_1 = arith.constant 0 : i32
    return %c0_i32, %c0_i32_0 : i32, i32
  }
  func.func @transform_5(%arg0: i32) -> (i32, i32) {
    %c0_i32 = arith.constant 0 : i32
    %c0_i32_0 = arith.constant 0 : i32
    %c0_i32_1 = arith.constant 0 : i32
    return %c0_i32, %c0_i32_0 : i32, i32
  }
  func.func @transform_6(%arg0: i32) -> (i32, i32) {
    %c0_i32 = arith.constant 0 : i32
    %c0_i32_0 = arith.constant 0 : i32
    return %arg0, %c0_i32 : i32, i32
  }
}

</mosaic_0001>

<bundles_post_ra>
// kernel: tpu_custom_call.1
= control target key start
LH: loop header
LB: loop body
LE: loop exit
PB: predicated region body
PF: predicated region fallthrough
CT: control target
= control target key end

     0   :  { %s1828_s0 = inlined_call_operand.hbm [shape: f32[8,8,128], index: 0, kind: input, shape index: {}]   ;;  %s1829_s1 = inlined_call_operand.vmem [shape: s32[8,1], index: 1, kind: input, shape index: {}]   ;;  %s1830_s2 = inlined_call_operand.hbm [shape: f32[128,128], index: 2, kind: input, shape index: {}]   ;;  %s1831_s3 = inlined_call_operand.vmem [shape: f32[1,128], index: 3, kind: input, shape index: {}]   ;;  %s1832_s4 = inlined_call_operand.vmem [shape: f32[1,128], index: 4, kind: input, shape index: {}]   ;;  %s1833_s5 = inlined_call_operand.<no memory space> [shape: f32[1,1], index: 5, kind: input, shape index: {}]   ;;  %s1834_s6 = inlined_call_operand.hbm [shape: f32[8,128], index: 6, kind: output, shape index: {}]  }
   0x1   :  { %v11_v0 = vstv %s1833_s5 }
   0x2   :  { %12 = vst [vmem:[#allocation2] sm:$0x1] %v11_v0 }
   0x3   :  { %13 = vsyncpa [#allocation4], 0 }
   0x4   :  { %14 = vsyncpa [#allocation7], 0 }
   0x5   :  { %15 = vsyncpa [#allocation5], 0  ;;  %s1548_s23 = smov [#allocation3]   ;;  %s1476_s27 = scalar_lea.hbm %s1828_s0, 1024 }
   0x6   :  { %s21_s24 = sshll.u32 %s1548_s23, 4  ;;  %p1477_p0 = scmp.ne.s32.totalorder %s1828_s0, %s1476_s27  ;;  %s22_s24 = int_to_ptr.vmem [resolvable:$true] %s21_s24 }
   0x7   :  { %p1480_p1 = scmp.lt.u32.totalorder %s1476_s27, %s1828_s0 }
   0x9   :  { %p1482_p2 = pnand %p1480_p1, %p1477_p0 }
   0xb   :  { %1485 = shalt.err (!%p1482_p2)
}
   0xc   :  { %s1486_s5 = scalar_lea.vmem %s22_s24, 1024  ;;  %p1491_p4 = scmp.lt.s32.totalorder %s22_s24, %s22_s24 }
   0xd   :  { %p1487_p3 = scmp.ne.s32.totalorder %s22_s24, %s1486_s5  ;;  %p1492_p5 = scmp.lt.s32.totalorder %s1486_s5, %s1486_s5 }
   0xf   :  { %p1493_p6 = por %p1492_p5, %p1491_p4 }
  0x11   :  { %p1494_p7 = pnand %p1493_p6, %p1487_p3 }
  0x13   :  { %1497 = shalt.err (!%p1494_p7)
}
  0x14   :  { %s1549_s8 = smov 128   ;;  %s1550_s9 = smov 8  }
  0x15   :  { %27 = dma.hbm_to_vmem [thread:$0]  %s1828_s0, 1024, %s22_s24, [#allocation4], %s1549_s8, %s1549_s8, %s1550_s9  }
  0x16   :  { %s1551_s12 = smov [#allocation6]   ;;  %s1498_s16 = scalar_lea.hbm %s1830_s2, 2048 }
  0x17   :  { %s35_s13 = sshll.u32 %s1551_s12, 4  ;;  %p1499_p8 = scmp.ne.s32.totalorder %s1830_s2, %s1498_s16  ;;  %s36_s13 = int_to_ptr.vmem [resolvable:$true] %s35_s13 }
  0x18   :  { %p1502_p9 = scmp.lt.u32.totalorder %s1498_s16, %s1830_s2 }
  0x1a   :  { %p1504_p10 = pnand %p1502_p9, %p1499_p8 }
  0x1c   :  { %1507 = shalt.err (!%p1504_p10)
}
  0x1d   :  { %s1508_s21 = scalar_lea.vmem %s36_s13, 2048  ;;  %p1513_p12 = scmp.lt.s32.totalorder %s36_s13, %s36_s13 }
  0x1e   :  { %p1509_p11 = scmp.ne.s32.totalorder %s36_s13, %s1508_s21  ;;  %p1514_p13 = scmp.lt.s32.totalorder %s1508_s21, %s1508_s21 }
  0x20   :  { %p1515_p0 = por %p1514_p13, %p1513_p12 }
  0x22   :  { %p1516_p1 = pnand %p1515_p0, %p1509_p11 }
  0x24   :  { %1519 = shalt.err (!%p1516_p1)
}
  0x25   :  { %41 = dma.hbm_to_vmem [thread:$0]  %s1830_s2, 2048, %s36_s13, [#allocation7], %s1549_s8, %s1549_s8, %s1550_s9  }
  0x26   :  { %1542 = dma.done.wait [#allocation4], 1024  }
  0x27   :  { %1543 = vsyncadd [#allocation4], 4294966272 }
  0x28   :  { %1544 = dma.done.wait [#allocation7], 2048  }
  0x29   :  { %1545 = vsyncadd [#allocation7], 4294965248  ;;  %v1552_v1 = vmov 0   ;;  %v1553_v2 = vmov 0.0   ;;  %v62_v3 = vld [vmem:[#allocation6] sm:$0xff]  ;;  %v63_v4 = vld [vmem:[#allocation6 + $0x8] sm:$0xff]  ;;  %v247_v37 = vlaneseq }
  0x2a   :  { %1456 = vset.pattern.permute.xlu0 %v1552_v1  ;;  %1457 = vset.pattern.permute.xlu1 %v1552_v1  ;;  %v64_v5 = vld [vmem:[#allocation6 + $0x10] sm:$0xff]  ;;  %v1416_v6 = vpack.c.bf16 %v63_v4, %v62_v3  ;;  %v65_v7 = vld [vmem:[#allocation6 + $0x18] sm:$0xff]  ;;  %v66_v9 = vld [vmem:[#allocation6 + $0x20] sm:$0xff]  ;;  %vm392_vm1 = vcmask 1041409   ;;  %vm394_vm2 = vcmask 1042434   ;;  %vm396_vm3 = vcmask 1043459  }
  0x2b   :  { %1376 = vmatprep.subr.mxu1 %v1553_v2  ;;  %v1420_v8 = vpack.c.bf16 %v65_v7, %v64_v5  ;;  %v67_v10 = vld [vmem:[#allocation6 + $0x28] sm:$0xff]  ;;  %v54_v12 = vld [vmem:[#allocation3] sm:$0xff]  ;;  %v68_v13 = vld [vmem:[#allocation6 + $0x30] sm:$0xff]  ;;  %v1644_v38 = vshrl.u32 %v247_v37, 7  ;;  %v1646_v39 = vand.u32 127, %v247_v37  ;;  %vm398_vm4 = vcmask 1044484  }
  0x2c   :  { %1417 = vmatprep.subr.bf16.mxu0 %v1416_v6  ;;  %v1424_v11 = vpack.c.bf16 %v67_v10, %v66_v9  ;;  %v69_v14 = vld [vmem:[#allocation6 + $0x38] sm:$0xff]  ;;  %1364 = vmatprep.mubr.f32.mxu0 %v54_v12  ;;  %v70_v18 = vld [vmem:[#allocation6 + $0x40] sm:$0xff]  ;;  %v71_v19 = vld [vmem:[#allocation6 + $0x48] sm:$0xff]  ;;  %vm400_vm5 = vcmask 1045509   ;;  %vm402_vm6 = vcmask 1046534   ;;  %vm404_vm7 = vcmask 1047559  }
  0x2d   :  { %1419 = vmatpush3.bf16.msra.mxu0 %v1416_v6  ;;  %1377 = vmatpush3.msra.mxu1 %v54_v12  ;;  %v249_v15 = vld [vmem:[%s1829_s1] sm:$0xff]  ;;  %v1428_v17 = vpack.c.bf16 %v69_v14, %v68_v13  ;;  %v1432_v20 = vpack.c.bf16 %v71_v19, %v70_v18  ;;  %v72_v21 = vld [vmem:[#allocation6 + $0x50] sm:$0xff]  ;;  %v75_v25 = vld [vmem:[#allocation6 + $0x68] sm:$0xff]  ;;  %v1649_v40 = vsub.s32 1, %v1644_v38  ;;  %v1652_v41 = vsub.s32 0, %v1644_v38 }
  0x2e   :  { %1421 = vmatprep.subr.bf16.mxu0 %v1420_v8  ;;  %1381 = vmatprep.subr.mxu1 %v1553_v2  ;;  %v1283_v16 = vld [vmem:[#allocation2] ss:$0 sm:$0xff]  ;;  %v74_v24 = vld [vmem:[#allocation6 + $0x60] sm:$0xff]  ;;  %v76_v27 = vld [vmem:[#allocation6 + $0x70] sm:$0xff]  ;;  %v1656_v43 = vsub.s32 2, %v1644_v38  ;;  %v1659_v44 = vsub.s32 4, %v1644_v38 }
  0x2f   :  { %251 = vperm.xlu0 %1456, %v249_v15   ;;  %236 = vperm.xlu1 %1457, %v1283_v16   ;;  %v73_v22 = vld [vmem:[#allocation6 + $0x58] sm:$0xff]  ;;  %v1440_v26 = vpack.c.bf16 %v75_v25, %v74_v24  ;;  %v1623_v30 = vld [vmem:[#allocation3 + $0x8] sm:$0xff]  ;;  %v1625_v31 = vld [vmem:[#allocation3 + $0x10] sm:$0xff]  ;;  %v1666_v49 = vsub.s32 3, %v1644_v38  ;;  %v1671_v52 = vsub.s32 5, %v1644_v38  ;;  %vm407_vm8 = vcmask 64512  }
  0x30   :  { %v1436_v23 = vpack.c.bf16 %v73_v22, %v72_v21  ;;  %v77_v28 = vld [vmem:[#allocation6 + $0x78] sm:$0xff]  ;;  %v1631_v33 = vld [vmem:[#allocation3 + $0x20] sm:$0xff]  ;;  %v1635_v34 = vld [vmem:[#allocation3 + $0x28] sm:$0xff]  ;;  %vm1554_vm9 = vmmov 0  }
  0x31   :  { %1423 = vmatpush3.bf16.msra.mxu0 %v1420_v8  ;;  %v1444_v29 = vpack.c.bf16 %v77_v28, %v76_v27  ;;  %v1629_v32 = vld [vmem:[#allocation3 + $0x18] sm:$0xff]  ;;  %v1637_v35 = vld [vmem:[#allocation3 + $0x30] sm:$0xff]  ;;  %v1685_v27 = vsub.s32 7, %v1644_v38  ;;  %1378 = vmatprep.mubr.msk.f32.mxu1 %vm1554_vm9, %v1553_v2 }
  0x32   :  { %1425 = vmatprep.subr.bf16.mxu0 %v1424_v11  ;;  %v1641_v36 = vld [vmem:[#allocation3 + $0x38] sm:$0xff] }
  0x33   :  { %v1281_v54 = vld [vmem:[%s1831_s3] ss:$0 sm:$0xff]  ;;  %s1555_s3 = smov [#allocation8]  }
  0x34   :  { %v1282_v59 = vld [vmem:[%s1832_s4] ss:$0 sm:$0xff]  ;;  %s1271_s4 = sshll.u32 %s1555_s3, 4  ;;  %s1272_s4 = int_to_ptr.vmem [resolvable:$true] %s1271_s4 }
  0x35   :  { %1427 = vmatpush3.bf16.msra.mxu0 %v1424_v11  ;;  %s1520_s27 = scalar_lea.vmem %s1272_s4, 128  ;;  %p1525_p3 = scmp.lt.s32.totalorder %s1272_s4, %s1272_s4 }
  0x36   :  { %1429 = vmatprep.subr.bf16.mxu0 %v1428_v17  ;;  %p1521_p2 = scmp.ne.s32.totalorder %s1272_s4, %s1520_s27  ;;  %p1526_p4 = scmp.lt.s32.totalorder %s1520_s27, %s1520_s27 }
  0x38   :  { %p1527_p5 = por %p1526_p4, %p1525_p3 }
  0x39   :  { %1431 = vmatpush3.bf16.msra.mxu0 %v1428_v17 }
  0x3a   :  { %1433 = vmatprep.subr.bf16.mxu0 %v1432_v20  ;;  %p1528_p6 = pnand %p1527_p5, %p1521_p2 }
  0x3d   :  { %1435 = vmatpush3.bf16.msra.mxu0 %v1432_v20 }
  0x3e   :  { %1437 = vmatprep.subr.bf16.mxu0 %v1436_v23 }
  0x41   :  { %1439 = vmatpush3.bf16.msra.mxu0 %v1436_v23  ;;  %v1681_v23 = vsub.s32 6, %v1644_v38 }
  0x42   :  { %1441 = vmatprep.subr.bf16.mxu0 %v1440_v26 }
  0x45   :  { %1443 = vmatpush3.bf16.msra.mxu0 %v1440_v26 }
  0x46   :  { %1445 = vmatprep.subr.bf16.mxu0 %v1444_v29 }
  0x49   :  { %1447 = vmatpush3.bf16.msra.mxu0 %v1444_v29 }
  0x4c   :  { %1365 = vmatmul.mubr.f32.vlgmr.msra.gmra.mrb[0].mxu0 %v1623_v30 }
  0x4d   :  { %1367 = vmatprep.mubr.f32.mxu0 %v1625_v31 }
  0x50   :  { %1368 = vmatmul.mubr.f32.gmra.mrb[2].mxu0 %v1629_v32 }
  0x51   :  { %1370 = vmatprep.mubr.f32.mxu0 %v1631_v33 }
  0x54   :  { %1371 = vmatmul.mubr.f32.gmra.mrb[4].mxu0 %v1635_v34 }
  0x55   :  { %1373 = vmatprep.mubr.f32.mxu0 %v1637_v35 }
  0x58   :  { %1374 = vmatmul.mubr.f32.gmra.mrb[6].mxu0 %v1641_v36 }
  0xae   :  { %v252_v42 = vpop.permute.xlu0 %251  ;;  %v237_v29 = vpop.permute.xlu1 %236 }
  0xaf   :  { %vm253_vm0 = vcmp.lt.s32.totalorder %v1646_v39, %v252_v42 }
  0xb0   :  { %v254_v45 = vsel %vm253_vm0, 1.0, %v1553_v2 }
  0xb1   :  { %v266_v46 = vrot.slane %v254_v45, %v1649_v40  ;;  %v259_v47 = vrot.slane %v254_v45, %v1652_v41  ;;  %v273_v48 = vrot.slane %v254_v45, %v1656_v43  ;;  %v287_v50 = vrot.slane %v254_v45, %v1659_v44 }
  0xb2   :  { %v280_v51 = vrot.slane %v254_v45, %v1666_v49  ;;  %v294_v53 = vrot.slane %v254_v45, %v1671_v52  ;;  %v301_v25 = vrot.slane %v254_v45, %v1681_v23  ;;  %v308_v28 = vrot.slane %v254_v45, %v1685_v27 }
  0xb3   :  { %268 = vbcast.lane.b32.xlu1 %v266_v46, 256  ;;  %261 = vbcast.lane.b32.xlu0 %v259_v47, 256 }
  0xb7   :  { %275 = vbcast.lane.b32.xlu1 %v273_v48, 256  ;;  %289 = vbcast.lane.b32.xlu0 %v287_v50, 256 }
  0xbb   :  { %282 = vbcast.lane.b32.xlu1 %v280_v51, 256 }
  0xbf   :  { %296 = vbcast.lane.b32.xlu1 %v294_v53, 256 }
 0x11f   :  { %v1366_v55 = vpop.f32.mrb[0].mxu0 }
 0x120   :  { %v157_v56 = vadd.f32 %v1366_v55, %v1281_v54  ;;  %v151_v57 = vpop.f32.mrb[1].mxu0 }
 0x121   :  { %v152_v58 = vadd.f32 %v1281_v54, %v151_v57 }
 0x122   :  { %v191_v60 = vmax.f32 %v157_v56, 0.0 }
 0x123   :  { %v190_v61 = vmax.f32 %v152_v58, 0.0  ;;  %v1369_v62 = vpop.f32.mrb[2].mxu0 }
 0x124   :  { %v167_v63 = vadd.f32 %v1369_v62, %v1281_v54  ;;  %v161_v0 = vpop.f32.mrb[3].mxu0  ;;  %v206_v1 = vmul.f32 %v1282_v59, %v191_v60 }
 0x125   :  { %v162_v3 = vadd.f32 %v1281_v54, %v161_v0  ;;  %v205_v4 = vmul.f32 %v1282_v59, %v190_v61  ;;  %v269_v37 = vpop.permute.xlu1 %268  ;;  %v262_v47 = vpop.permute.xlu0 %261 }
 0x126   :  { %v193_v5 = vmax.f32 %v167_v63, 0.0  ;;  %215 = vadd.xlane.f32.xlu1 %v206_v1 }
 0x127   :  { %213 = vadd.xlane.f32.xlu0 %v205_v4  ;;  %v1372_v6 = vpop.f32.mrb[4].mxu0  ;;  %v192_v7 = vmax.f32 %v162_v3, 0.0 }
 0x128   :  { %v208_v8 = vmul.f32 %v1282_v59, %v193_v5  ;;  %v177_v9 = vadd.f32 %v1372_v6, %v1281_v54  ;;  %v171_v10 = vpop.f32.mrb[5].mxu0 }
 0x129   :  { %v172_v13 = vadd.f32 %v1281_v54, %v171_v10  ;;  %v207_v14 = vmul.f32 %v1282_v59, %v192_v7  ;;  %v276_v42 = vpop.permute.xlu1 %275  ;;  %v290_v50 = vpop.permute.xlu0 %289 }
 0x12a   :  { %219 = vadd.xlane.f32.xlu1 %v208_v8  ;;  %v195_v11 = vmax.f32 %v177_v9, 0.0 }
 0x12b   :  { %v1375_v12 = vpop.f32.mrb[6].mxu0  ;;  %v194_v18 = vmax.f32 %v172_v13, 0.0 }
 0x12c   :  { %v181_v15 = vpop.f32.mrb[7].mxu0  ;;  %v187_v16 = vadd.f32 %v1375_v12, %v1281_v54  ;;  %v210_v17 = vmul.f32 %v1282_v59, %v195_v11 }
 0x12d   :  { %v182_v20 = vadd.f32 %v1281_v54, %v181_v15  ;;  %v209_v21 = vmul.f32 %v1282_v59, %v194_v18  ;;  %v283_v46 = vpop.permute.xlu1 %282  ;;  %v1708_v15 = vsub.s32 %v1646_v39, %v1644_v38 }
 0x12e   :  { %217 = vadd.xlane.f32.xlu1 %v207_v14  ;;  %v197_v19 = vmax.f32 %v187_v16, 0.0 }
 0x12f   :  { %v196_v24 = vmax.f32 %v182_v20, 0.0 }
 0x130   :  { %v212_v22 = vmul.f32 %v1282_v59, %v197_v19 }
 0x131   :  { %v211_v26 = vmul.f32 %v1282_v59, %v196_v24  ;;  %v297_v48 = vpop.permute.xlu1 %296 }
 0x132   :  { %223 = vadd.xlane.f32.xlu1 %v210_v17 }
 0x136   :  { %221 = vadd.xlane.f32.xlu1 %v209_v21 }
 0x13a   :  { %227 = vadd.xlane.f32.xlu1 %v212_v22 }
 0x13d   :  { %303 = vbcast.lane.b32.xlu0 %v301_v25, 256 }
 0x13e   :  { %225 = vadd.xlane.f32.xlu1 %v211_v26 }
 0x14f   :  { %310 = vbcast.lane.b32.xlu1 %v308_v28, 256 }
 0x1b3   :  { %v216_v51 = vpop.xlane.xlu1 %215 }
 0x1b4   :  { %v240_v53 = vadd.f32 %v237_v29, %v216_v51  ;;  %v214_v54 = vpop.xlane.xlu0 %213 }
 0x1b5   :  { %v239_v55 = vadd.f32 %v237_v29, %v214_v54 }
 0x1b6   :  { %v1688_v56 = vadd.f32 %v269_v37, %v240_v53 }
 0x1b7   :  { %v1690_v57 = vadd.f32 %v262_v47, %v239_v55  ;;  %v220_v58 = vpop.xlane.xlu1 %219 }
 0x1b8   :  { %v242_v59 = vadd.f32 %v237_v29, %v220_v58  ;;  %340 = vperm.xlu1 %1457, %v1688_v56   ;;  %v304_v9 = vpop.permute.xlu0 %303 }
 0x1b9   :  { %337 = vperm.xlu0 %1456, %v1690_v57  }
 0x1ba   :  { %v1694_v45 = vadd.f32 %v283_v46, %v242_v59 }
 0x1bb   :  { %v218_v60 = vpop.xlane.xlu1 %217 }
 0x1bc   :  { %v241_v61 = vadd.f32 %v237_v29, %v218_v60  ;;  %346 = vperm.xlu1 %1457, %v1694_v45  }
 0x1be   :  { %v322_v62 = vadd.f32 %v276_v42, %v241_v61 }
 0x1bf   :  { %v224_v63 = vpop.xlane.xlu1 %223 }
 0x1c0   :  { %v244_v0 = vadd.f32 %v237_v29, %v224_v63  ;;  %343 = vperm.xlu0 %1456, %v322_v62  }
 0x1c2   :  { %v1697_v1 = vadd.f32 %v297_v48, %v244_v0 }
 0x1c3   :  { %v222_v3 = vpop.xlane.xlu1 %221 }
 0x1c4   :  { %v243_v4 = vadd.f32 %v237_v29, %v222_v3  ;;  %352 = vperm.xlu1 %1457, %v1697_v1  }
 0x1c6   :  { %v324_v5 = vadd.f32 %v290_v50, %v243_v4 }
 0x1c7   :  { %v228_v6 = vpop.xlane.xlu1 %227 }
 0x1c8   :  { %349 = vperm.xlu0 %1456, %v324_v5   ;;  %v246_v10 = vadd.f32 %v237_v29, %v228_v6 }
 0x1cb   :  { %v226_v7 = vpop.xlane.xlu1 %225 }
 0x1cc   :  { %v245_v8 = vadd.f32 %v237_v29, %v226_v7 }
 0x1ce   :  { %v1700_v11 = vadd.f32 %v304_v9, %v245_v8 }
 0x1cf   :  { %v311_v12 = vpop.permute.xlu1 %310 }
 0x1d0   :  { %v1702_v13 = vadd.f32 %v311_v12, %v246_v10  ;;  %355 = vperm.xlu0 %1456, %v1700_v11  }
 0x1d2   :  { %358 = vperm.xlu1 %1457, %v1702_v13  }
 0x237   :  { %v341_v16 = vpop.permute.xlu1 %340 }
 0x238   :  { %v338_v14 = vpop.permute.xlu0 %337  ;;  %v367_v18 = vrot.slane %v341_v16, %v1708_v15 }
 0x239   :  { %v363_v19 = vrot.slane %v338_v14, %v1708_v15 }
 0x23b   :  { %v347_v22 = vpop.permute.xlu1 %346  ;;  %v393_v24 = vsel %vm392_vm1, %v367_v18, %v363_v19 }
 0x23c   :  { %v375_v39 = vrot.slane %v347_v22, %v1708_v15 }
 0x23f   :  { %v344_v17 = vpop.permute.xlu0 %343 }
 0x240   :  { %v371_v20 = vrot.slane %v344_v17, %v1708_v15 }
 0x242   :  { %v395_v25 = vsel %vm394_vm2, %v371_v20, %v393_v24 }
 0x243   :  { %v353_v26 = vpop.permute.xlu1 %352  ;;  %v397_v28 = vsel %vm396_vm3, %v375_v39, %v395_v25 }
 0x244   :  { %v383_v37 = vrot.slane %v353_v26, %v1708_v15 }
 0x247   :  { %v350_v21 = vpop.permute.xlu0 %349 }
 0x248   :  { %v379_v38 = vrot.slane %v350_v21, %v1708_v15 }
 0x24a   :  { %v399_v29 = vsel %vm398_vm4, %v379_v38, %v397_v28 }
 0x24b   :  { %v401_v48 = vsel %vm400_vm5, %v383_v37, %v399_v29 }
 0x24f   :  { %v356_v42 = vpop.permute.xlu0 %355 }
 0x250   :  { %v387_v46 = vrot.slane %v356_v42, %v1708_v15 }
 0x251   :  { %v359_v47 = vpop.permute.xlu1 %358 }
 0x252   :  { %v391_v50 = vrot.slane %v359_v47, %v1708_v15  ;;  %v403_v51 = vsel %vm402_vm6, %v387_v46, %v401_v48 }
 0x254   :  { %v405_v53 = vsel %vm404_vm7, %v391_v50, %v403_v51 }
 0x255   :  { %v408_v54 = vsel %vm407_vm8, %v405_v53, -inf }
 0x256   :  { %409 = vmax.xlane.f32.xlu0 %v408_v54 }
 0x2e3   :  { %v410_v55 = vpop.xlane.xlu0 %409 }
 0x2e4   :  { %v415_v58 = vrot.slane %v410_v55, %v1652_v41  ;;  %v419_v59 = vrot.slane %v410_v55, %v1649_v40  ;;  %v423_v60 = vrot.slane %v410_v55, %v1656_v43  ;;  %v427_v3 = vrot.slane %v410_v55, %v1666_v49 }
 0x2e5   :  { %v431_v7 = vrot.slane %v410_v55, %v1659_v44  ;;  %v435_v10 = vrot.slane %v410_v55, %v1671_v52  ;;  %v443_v18 = vrot.slane %v410_v55, %v1685_v27 }
 0x2e6   :  { %v452_v61 = vsub.f32 %v1690_v57, %v415_v58  ;;  %v453_v63 = vsub.f32 %v1688_v56, %v419_v59  ;;  %v454_v4 = vsub.f32 %v322_v62, %v423_v60  ;;  %v455_v8 = vsub.f32 %v1694_v45, %v427_v3 }
 0x2e7   :  { %v456_v12 = vsub.f32 %v324_v5, %v431_v7  ;;  %v439_v56 = vrot.slane %v410_v55, %v1681_v23  ;;  %v457_v16 = vsub.f32 %v1697_v1, %v435_v10  ;;  %v459_v5 = vsub.f32 %v1702_v13, %v443_v18 }
 0x2e8   :  { %v460_v0 = vmul.f32 1.442695, %v452_v61  ;;  %v462_v6 = vmul.f32 1.442695, %v453_v63  ;;  %v464_v9 = vmul.f32 1.442695, %v454_v4 }
 0x2e9   :  { %v466_v14 = vmul.f32 1.442695, %v455_v8  ;;  %v468_v62 = vmul.f32 1.442695, %v456_v12  ;;  %v458_v45 = vsub.f32 %v1700_v11, %v439_v56  ;;  %v470_v19 = vmul.f32 1.442695, %v457_v16 }
 0x2ea   :  { %1458 = vpow2.f32 %v460_v0  ;;  %v474_v1 = vmul.f32 1.442695, %v459_v5 }
 0x2eb   :  { %1460 = vpow2.f32 %v462_v6  ;;  %v472_v21 = vmul.f32 1.442695, %v458_v45 }
 0x2ec   :  { %1462 = vpow2.f32 %v464_v9 }
 0x2ed   :  { %1464 = vpow2.f32 %v466_v14 }
 0x2ee   :  { %1466 = vpow2.f32 %v468_v62 }
 0x2ef   :  { %1468 = vpow2.f32 %v470_v19 }
 0x2f0   :  { %1470 = vpow2.f32 %v472_v21 }
 0x2f1   :  { %1472 = vpow2.f32 %v474_v1 }
 0x2f4   :  { %v1459_v57 = vpop.eup %1458 }
 0x2f5   :  { %485 = vperm.xlu1 %1457, %v1459_v57   ;;  %v1461_v17 = vpop.eup %1460 }
 0x2f6   :  { %v1463_v20 = vpop.eup %1462 }
 0x2f7   :  { %v1465_v22 = vpop.eup %1464 }
 0x2f8   :  { %v1467_v24 = vpop.eup %1466 }
 0x2f9   :  { %488 = vperm.xlu1 %1457, %v1461_v17   ;;  %v1469_v25 = vpop.eup %1468 }
 0x2fa   :  { %v1471_v38 = vpop.eup %1470 }
 0x2fb   :  { %v1473_v11 = vpop.eup %1472 }
 0x2fd   :  { %491 = vperm.xlu1 %1457, %v1463_v20  }
 0x301   :  { %494 = vperm.xlu1 %1457, %v1465_v22  }
 0x305   :  { %497 = vperm.xlu1 %1457, %v1467_v24  }
 0x309   :  { %500 = vperm.xlu1 %1457, %v1469_v25  }
 0x30d   :  { %503 = vperm.xlu1 %1457, %v1471_v38  }
 0x311   :  { %506 = vperm.xlu1 %1457, %v1473_v11  }
 0x374   :  { %v486_v39 = vpop.permute.xlu1 %485 }
 0x375   :  { %v511_v47 = vrot.slane %v486_v39, %v1708_v15 }
 0x378   :  { %v489_v26 = vpop.permute.xlu1 %488 }
 0x379   :  { %v515_v42 = vrot.slane %v489_v26, %v1708_v15 }
 0x37b   :  { %v540_v53 = vsel %vm392_vm1, %v515_v42, %v511_v47 }
 0x37c   :  { %v492_v28 = vpop.permute.xlu1 %491 }
 0x37d   :  { %v519_v46 = vrot.slane %v492_v28, %v1708_v15 }
 0x37f   :  { %v541_v55 = vsel %vm394_vm2, %v519_v46, %v540_v53 }
 0x380   :  { %v495_v29 = vpop.permute.xlu1 %494 }
 0x381   :  { %v523_v48 = vrot.slane %v495_v29, %v1708_v15 }
 0x383   :  { %v542_v59 = vsel %vm396_vm3, %v523_v48, %v541_v55 }
 0x384   :  { %v498_v13 = vpop.permute.xlu1 %497 }
 0x385   :  { %v527_v50 = vrot.slane %v498_v13, %v1708_v15 }
 0x387   :  { %v543_v60 = vsel %vm398_vm4, %v527_v50, %v542_v59 }
 0x388   :  { %v501_v37 = vpop.permute.xlu1 %500 }
 0x389   :  { %v531_v54 = vrot.slane %v501_v37, %v1708_v15 }
 0x38b   :  { %v544_v63 = vsel %vm400_vm5, %v531_v54, %v543_v60 }
 0x38c   :  { %v504_v51 = vpop.permute.xlu1 %503 }
 0x38d   :  { %v535_v58 = vrot.slane %v504_v51, %v1708_v15 }
 0x38f   :  { %v545_v3 = vsel %vm402_vm6, %v535_v58, %v544_v63 }
 0x390   :  { %v507_v61 = vpop.permute.xlu1 %506 }
 0x391   :  { %v539_v0 = vrot.slane %v507_v61, %v1708_v15 }
 0x393   :  { %v546_v4 = vsel %vm404_vm7, %v539_v0, %v545_v3 }
 0x394   :  { %v548_v6 = vsel %vm407_vm8, %v546_v4, 0.0 }
 0x395   :  { %549 = vadd.xlane.f32.xlu0 %v548_v6 }
 0x422   :  { %v550_v7 = vpop.xlane.xlu0 %549 }
 0x423   :  { %1474 = vrcp.f32 %v550_v7 }
 0x42d   :  { %v1475_v8 = vpop.eup %1474 }
 0x42e   :  { %v560_v9 = vrot.slane %v1475_v8, %v1649_v40  ;;  %v556_v10 = vrot.slane %v1475_v8, %v1652_v41  ;;  %v564_v56 = vrot.slane %v1475_v8, %v1656_v43  ;;  %v568_v62 = vrot.slane %v1475_v8, %v1666_v49 }
 0x42f   :  { %v572_v45 = vrot.slane %v1475_v8, %v1659_v44  ;;  %v576_v41 = vrot.slane %v1475_v8, %v1671_v52  ;;  %v580_v43 = vrot.slane %v1475_v8, %v1681_v23  ;;  %v584_v19 = vrot.slane %v1475_v8, %v1685_v27 }
 0x430   :  { %v594_v12 = vmul.f32 %v1461_v17, %v560_v9  ;;  %v593_v14 = vmul.f32 %v1459_v57, %v556_v10  ;;  %v595_v16 = vmul.f32 %v1463_v20, %v564_v56  ;;  %v596_v18 = vmul.f32 %v1465_v22, %v568_v62 }
 0x431   :  { %v597_v40 = vmul.f32 %v1467_v24, %v572_v45  ;;  %v598_v57 = vmul.f32 %v1469_v25, %v576_v41  ;;  %v599_v17 = vmul.f32 %v1471_v38, %v580_v43  ;;  %v600_v20 = vmul.f32 %v1473_v11, %v584_v19 }
 0x432   :  { %683 = vperm.xlu0 %1456, %v594_v12   ;;  %603 = vperm.xlu1 %1457, %v593_v14  }
 0x436   :  { %763 = vperm.xlu1 %1457, %v595_v16  }
 0x43a   :  { %843 = vperm.xlu1 %1457, %v596_v18  }
 0x43e   :  { %923 = vperm.xlu1 %1457, %v597_v40  }
 0x442   :  { %1003 = vperm.xlu1 %1457, %v598_v57  }
 0x446   :  { %1083 = vperm.xlu1 %1457, %v599_v17  }
 0x44a   :  { %1163 = vperm.xlu1 %1457, %v600_v20  }
 0x4b1   :  { %v604_v49 = vpop.permute.xlu1 %603  ;;  %v684_v21 = vpop.permute.xlu0 %683 }
 0x4b2   :  { %v608_v5 = vrot.slane %v604_v49, %v1708_v15  ;;  %v688_v52 = vrot.slane %v684_v21, %v1708_v15 }
 0x4b4   :  { %1379 = vmatmul.mubr.msk.f32.vlgmr.msra.gmra.mrb[0].mxu1 %vm407_vm8, %v608_v5 }
 0x4b5   :  { %1382 = vmatpush3.msra.mxu1 %v1623_v30  ;;  %v764_v44 = vpop.permute.xlu1 %763  ;;  %1383 = vmatprep.mubr.msk.f32.mxu1 %vm1554_vm9, %v1553_v2 }
 0x4b6   :  { %1386 = vmatprep.subr.mxu1 %v1553_v2  ;;  %v768_v27 = vrot.slane %v764_v44, %v1708_v15 }
 0x4b8   :  { %1384 = vmatmul.mubr.msk.f32.vlgmr.msra.gmra.mrb[2].mxu1 %vm407_vm8, %v688_v52 }
 0x4b9   :  { %1387 = vmatpush3.msra.mxu1 %v1625_v31  ;;  %v844_v23 = vpop.permute.xlu1 %843  ;;  %1388 = vmatprep.mubr.msk.f32.mxu1 %vm1554_vm9, %v1553_v2 }
 0x4ba   :  { %1391 = vmatprep.subr.mxu1 %v1553_v2  ;;  %v848_v22 = vrot.slane %v844_v23, %v1708_v15 }
 0x4bc   :  { %1389 = vmatmul.mubr.msk.f32.vlgmr.msra.gmra.mrb[4].mxu1 %vm407_vm8, %v768_v27 }
 0x4bd   :  { %1392 = vmatpush3.msra.mxu1 %v1629_v32  ;;  %v924_v30 = vpop.permute.xlu1 %923  ;;  %1393 = vmatprep.mubr.msk.f32.mxu1 %vm1554_vm9, %v1553_v2 }
 0x4be   :  { %1396 = vmatprep.subr.mxu1 %v1553_v2  ;;  %v928_v1 = vrot.slane %v924_v30, %v1708_v15 }
 0x4c0   :  { %1394 = vmatmul.mubr.msk.f32.vlgmr.msra.gmra.mrb[6].mxu1 %vm407_vm8, %v848_v22 }
 0x4c1   :  { %1397 = vmatpush3.msra.mxu1 %v1631_v33  ;;  %v1004_v31 = vpop.permute.xlu1 %1003  ;;  %1398 = vmatprep.mubr.msk.f32.mxu1 %vm1554_vm9, %v1553_v2 }
 0x4c2   :  { %1401 = vmatprep.subr.mxu1 %v1553_v2  ;;  %v1008_v24 = vrot.slane %v1004_v31, %v1708_v15 }
 0x4c4   :  { %1399 = vmatmul.mubr.msk.f32.vlgmr.msra.gmra.mrb[8].mxu1 %vm407_vm8, %v928_v1 }
 0x4c5   :  { %1402 = vmatpush3.msra.mxu1 %v1635_v34  ;;  %v1084_v32 = vpop.permute.xlu1 %1083  ;;  %1403 = vmatprep.mubr.msk.f32.mxu1 %vm1554_vm9, %v1553_v2 }
 0x4c6   :  { %1406 = vmatprep.subr.mxu1 %v1553_v2  ;;  %v1088_v33 = vrot.slane %v1084_v32, %v1708_v15 }
 0x4c8   :  { %1404 = vmatmul.mubr.msk.f32.vlgmr.msra.gmra.mrb[10].mxu1 %vm407_vm8, %v1008_v24 }
 0x4c9   :  { %1407 = vmatpush3.msra.mxu1 %v1637_v35  ;;  %1408 = vmatprep.mubr.msk.f32.mxu1 %vm1554_vm9, %v1553_v2  ;;  %v1164_v34 = vpop.permute.xlu1 %1163 }
 0x4ca   :  { %1411 = vmatprep.subr.mxu1 %v1553_v2  ;;  %v1168_v25 = vrot.slane %v1164_v34, %v1708_v15 }
 0x4cc   :  { %1409 = vmatmul.mubr.msk.f32.vlgmr.msra.gmra.mrb[12].mxu1 %vm407_vm8, %v1088_v33 }
 0x4cd   :  { %1412 = vmatpush3.msra.mxu1 %v1641_v36  ;;  %1413 = vmatprep.mubr.msk.f32.mxu1 %vm1554_vm9, %v1553_v2 }
 0x4d0   :  { %1414 = vmatmul.mubr.msk.f32.vlgmr.msra.gmra.mrb[14].mxu1 %vm407_vm8, %v1168_v25 }
 0x587   :  { %v677_v35 = vpop.f32.mrb[0].mxu1 }
 0x588   :  { %v1380_v38 = vpop.f32.mrb[1].mxu1 }
 0x58b   :  { %v757_v11 = vpop.f32.mrb[2].mxu1 }
 0x58c   :  { %v1249_v39 = vrot.slane %v757_v11, 7  ;;  %v1385_v26 = vpop.f32.mrb[3].mxu1 }
 0x58e   :  { %v1250_v28 = vsel %vm392_vm1, %v1249_v39, %v677_v35 }
 0x58f   :  { %v837_v29 = vpop.f32.mrb[4].mxu1 }
 0x590   :  { %v1251_v13 = vrot.slane %v837_v29, 6  ;;  %v1390_v37 = vpop.f32.mrb[5].mxu1 }
 0x592   :  { %v1252_v42 = vsel %vm394_vm2, %v1251_v13, %v1250_v28 }
 0x593   :  { %v917_v36 = vpop.f32.mrb[6].mxu1 }
 0x594   :  { %v1253_v46 = vrot.slane %v917_v36, 5  ;;  %v1395_v47 = vpop.f32.mrb[7].mxu1 }
 0x596   :  { %v1254_v2 = vsel %vm396_vm3, %v1253_v46, %v1252_v42 }
 0x597   :  { %v997_v15 = vpop.f32.mrb[8].mxu1 }
 0x598   :  { %v1255_v48 = vrot.slane %v997_v15, 4  ;;  %v1400_v50 = vpop.f32.mrb[9].mxu1 }
 0x59a   :  { %v1256_v51 = vsel %vm398_vm4, %v1255_v48, %v1254_v2 }
 0x59b   :  { %v1077_v53 = vpop.f32.mrb[10].mxu1 }
 0x59c   :  { %v1257_v54 = vrot.slane %v1077_v53, 3  ;;  %v1405_v55 = vpop.f32.mrb[11].mxu1 }
 0x59e   :  { %v1258_v58 = vsel %vm400_vm5, %v1257_v54, %v1256_v51 }
 0x59f   :  { %v1157_v59 = vpop.f32.mrb[12].mxu1 }
 0x5a0   :  { %v1259_v60 = vrot.slane %v1157_v59, 2  ;;  %v1410_v61 = vpop.f32.mrb[13].mxu1 }
 0x5a2   :  { %v1260_v63 = vsel %vm402_vm6, %v1259_v60, %v1258_v58 }
 0x5a3   :  { %v1237_v0 = vpop.f32.mrb[14].mxu1 }
 0x5a4   :  { %v1261_v3 = vrot.slane %v1237_v0, 1  ;;  %v1415_v4 = vpop.f32.mrb[15].mxu1 }
 0x5a6   :  { %v1262_v6 = vsel %vm404_vm7, %v1261_v3, %v1260_v63 }
 0x5a7   :  { %1264 = vst [vmem:[#allocation8] sm:$0xff] %v1262_v6 }
 0x5a8   :  { %1531 = shalt.err (!%p1528_p6)
}
 0x5a9   :  { %s1532_s30 = scalar_lea.hbm %s1834_s6, 128 }
 0x5aa   :  { %p1533_p7 = scmp.ne.s32.totalorder %s1834_s6, %s1532_s30  ;;  %p1536_p8 = scmp.lt.u32.totalorder %s1532_s30, %s1834_s6 }
 0x5ac   :  { %p1538_p9 = pnand %p1536_p8, %p1533_p7 }
 0x5ae   :  { %1541 = shalt.err (!%p1538_p9)
}
 0x5af   :  { %1274 = dma.vmem_to_hbm [thread:$0]  %s1272_s4, 128, %s1834_s6, [#allocation5]  }
 0x5b0   :  { %1546 = dma.done.wait [#allocation5], 128  }
 0x5b1   :  { %1547 = vsyncadd [#allocation5], 4294967168 }
 0x5b2   :  { %1278 = vsyncpa [#allocation4], 1 }
 0x5b3   :  { %1279 = vsyncpa [#allocation7], 1 }
 0x5b4   :  { %1280 = vsyncpa [#allocation5], 1 }

</bundles_post_ra>
